<compile_context>
chip_gen: v7x
topology: tpu7x:2x2x1
jax: 0.10.0
libtpu: 0.0.40
codegen_flags: <defaults>
</compile_context>

<pallas_src>
import functools

import jax
import jax.numpy as jnp
from jax.experimental import pallas as pl
from jax.experimental.pallas import tpu as pltpu


def _act(x):
    # `activation` is a constructor arg of the PyTorch module; we fix it to GELU.
    # NOTE: explicit tanh approximation (PyTorch nn.GELU() default is exact erf GELU,
    # ~1e-3 difference).  The tanh path maps onto the otherwise-idle EUP slot.
    return jax.nn.gelu(x, approximate=True)


def _mxu_dot(a, w):
    # bf16 operands, f32 accumulation: native MXU rate on v5e/v6e/v7x.
    return jnp.dot(a.astype(jnp.bfloat16), w.astype(jnp.bfloat16),
                   preferred_element_type=jnp.float32)


def fourier_mlp_kernel(tx_ref, cp_ref, w_te_ref, w_embed_ref, w_hco_ref, b_ref, o_ref):
    """One batch tile of the fused FourierMLP forward.

    tx_ref      : (TB, 1+dim) f32   -- [t | x]
    cp_ref      : (2, C)      f32   -- [timestep_coeff ; timestep_phase]
    w_te_ref    : (2C, C)     bf16  -- TimeEmbed hidden Linear(2C->C), (in, out) layout
    w_embed_ref : (C+dim, C)  bf16  -- [[TimeEmbed out W]; [input_embed W]] stacked on K
    w_hco_ref   : (3, C, C)   bf16  -- [hidden1 ; hidden2 ; out (zero-padded to C cols)]
    b_ref       : (5, C)      f32   -- [te_h_b ; te_o_b + in_b ; h1_b ; h2_b ; out_b (padded)]
    o_ref       : (TB, dim)   f32
    """
    dim = o_ref.shape[-1]
    tx = tx_ref[...]
    t = tx[:, 0:1]                                    # (TB, 1)
    x = tx[:, 1:]                                     # (TB, dim)

    coeff = cp_ref[0:1, :]                            # (1, C)
    phase = cp_ref[1:2, :]                            # (1, C)
    b = b_ref[...]                                    # (5, C)

    # --- TimeEmbed hidden: act(cat([sin, cos], lanes) @ W_h + b_h), one K=2C dot ---
    arg = coeff * t + phase                           # (TB, C)
    sc = jnp.concatenate([jnp.sin(arg), jnp.cos(arg)], axis=1)          # (TB, 2C)
    h = _act(_mxu_dot(sc, w_te_ref[...]) + b[0:1, :])                   # (TB, C)

    # --- fused (TimeEmbed out-layer + input embed): [h | x] @ [[W_te_o]; [W_in]] + b ---
    hx = jnp.concatenate([h, x], axis=1)                                # (TB, C+dim)
    embed = _mxu_dot(hx, w_embed_ref[...]) + b[1:2, :]                  # (TB, C)

    # --- two hidden layers + output layer (output weight zero-padded to C lanes) ---
    w_hco = w_hco_ref[...]                                              # (3, C, C)
    embed = _mxu_dot(_act(embed), w_hco[0]) + b[2:3, :]
    embed = _mxu_dot(_act(embed), w_hco[1]) + b[3:4, :]
    out = _mxu_dot(_act(embed), w_hco[2]) + b[4:5, :]                   # (TB, C)

    o_ref[...] = out[:, :dim].astype(o_ref.dtype)


@functools.partial(jax.jit, static_argnames=("dim", "channels", "block_batch"))
def fourier_mlp_forward(t, x, packed, *, dim, channels, block_batch=1024):
    B = x.shape[0]
    C = channels
    # torch glue: t.view(-1, 1).expand(x.shape[0], 1).float(), then pack [t | x].
    t2 = jnp.broadcast_to(jnp.reshape(t, (-1, 1)), (B, 1)).astype(jnp.float32)
    tx = jnp.concatenate([t2, x.astype(jnp.float32)], axis=1)           # (B, 1+dim)

    tb = min(block_batch, B)            # block_batch must stay a multiple of 8
    grid = (pl.cdiv(B, tb),)

    const2 = lambda i: (0, 0)           # weights/biases: same block every step -> VMEM-resident
    const3 = lambda i: (0, 0, 0)
    in_specs = [
        pl.BlockSpec((tb, 1 + dim), lambda i: (i, 0)),
        pl.BlockSpec((2, C), const2),
        pl.BlockSpec((2 * C, C), const2),
        pl.BlockSpec((C + dim, C), const2),
        pl.BlockSpec((3, C, C), const3),
        pl.BlockSpec((5, C), const2),
    ]
    out_specs = pl.BlockSpec((tb, dim), lambda i: (i, 0))

    return pl.pallas_call(
        fourier_mlp_kernel,
        out_shape=jax.ShapeDtypeStruct((B, dim), jnp.float32),
        grid=grid,
        in_specs=in_specs,
        out_specs=out_specs,
        compiler_params=pltpu.CompilerParams(
            dimension_semantics=("parallel",),      # shards batch tiles across TCs on v7x
            vmem_limit_bytes=32 * 1024 * 1024,      # explicit budget; safe on v7x's 64 MiB VMEM
        ),
    )(tx, packed["coeff_phase"], packed["w_te"], packed["w_embed"],
      packed["w_hco"], packed["biases"])


def make_params(key, dim, channels):
    """Deterministic synthetic FourierMLP parameters; weights stored as (in, out)."""
    C = channels
    ks = jax.random.split(key, 8)

    def lin(k, fan_in, fan_out):
        kw, kb = jax.random.split(k)
        bound = 1.0 / jnp.sqrt(fan_in)
        w = jax.random.uniform(kw, (fan_in, fan_out), jnp.float32, -bound, bound)
        b = jax.random.uniform(kb, (1, fan_out), jnp.float32, -bound, bound)
        return w, b

    coeff = jnp.linspace(0.1, 100.0, C, dtype=jnp.float32).reshape(1, C)
    phase = jax.random.normal(ks[0], (1, C), jnp.float32)
    te_h_w, te_h_b = lin(ks[1], 2 * C, C)     # TimeEmbed hidden Linear(2C, C)
    te_o_w, te_o_b = lin(ks[2], C, C)         # TimeEmbed out    Linear(C, C)
    in_w, in_b = lin(ks[3], dim, C)           # input_embed      Linear(dim, C)
    h1_w, h1_b = lin(ks[4], C, C)
    h2_w, h2_b = lin(ks[5], C, C)
    out_w, out_b = lin(ks[6], C, dim)         # out_layer        Linear(C, dim)
    return dict(coeff=coeff, phase=phase,
                te_h_w=te_h_w, te_h_b=te_h_b, te_o_w=te_o_w, te_o_b=te_o_b,
                in_w=in_w, in_b=in_b, h1_w=h1_w, h1_b=h1_b, h2_w=h2_w, h2_b=h2_b,
                out_w=out_w, out_b=out_b)


def pack_params(p, dim, channels):
    """Pack 15 parameter tensors into 5 kernel inputs (few, larger DMAs; bf16 weights)."""
    C = channels
    coeff_phase = jnp.concatenate([p["coeff"], p["phase"]], axis=0)                   # (2, C) f32
    w_te = p["te_h_w"].astype(jnp.bfloat16)                                           # (2C, C)
    w_embed = jnp.concatenate([p["te_o_w"], p["in_w"]], axis=0).astype(jnp.bfloat16)  # (C+dim, C)
    out_w_pad = jnp.pad(p["out_w"], ((0, 0), (0, C - dim)))                           # (C, C)
    w_hco = jnp.stack([p["h1_w"], p["h2_w"], out_w_pad], axis=0).astype(jnp.bfloat16) # (3, C, C)
    out_b_pad = jnp.pad(p["out_b"], ((0, 0), (0, C - dim)))                           # (1, C)
    biases = jnp.concatenate(
        [p["te_h_b"], p["te_o_b"] + p["in_b"], p["h1_b"], p["h2_b"], out_b_pad],
        axis=0)                                                                       # (5, C) f32
    return dict(coeff_phase=coeff_phase, w_te=w_te, w_embed=w_embed,
                w_hco=w_hco, biases=biases)


def fourier_mlp_reference(t, x, p, *, matmul_dtype=jnp.float32):
    """Pure-JAX reference mirroring the PyTorch forward (unpacked params)."""
    def mm(a, w):
        return jnp.dot(a.astype(matmul_dtype), w.astype(matmul_dtype),
                       preferred_element_type=jnp.float32)

    B = x.shape[0]
    t2 = jnp.broadcast_to(jnp.reshape(t, (-1, 1)), (B, 1)).astype(jnp.float32)
    x = x.astype(jnp.float32)
    arg = p["coeff"] * t2 + p["phase"]
    embed_t = jnp.concatenate([jnp.sin(arg), jnp.cos(arg)], axis=1)
    embed_t = _act(mm(embed_t, p["te_h_w"]) + p["te_h_b"])
    embed_t = mm(embed_t, p["te_o_w"]) + p["te_o_b"]
    embed_x = mm(x, p["in_w"]) + p["in_b"]
    embed = embed_x + embed_t
    embed = mm(_act(embed), p["h1_w"]) + p["h1_b"]
    embed = mm(_act(embed), p["h2_w"]) + p["h2_b"]
    return mm(_act(embed), p["out_w"]) + p["out_b"]


if __name__ == "__main__":
    DIM = 4        # x feature dimension (dim_out)
    CHANNELS = 64  # hidden width
    B = 8          # batch

    key = jax.random.PRNGKey(0)
    kp, kt, kx = jax.random.split(key, 3)

    params = make_params(kp, DIM, CHANNELS)
    packed = pack_params(params, DIM, CHANNELS)
    t = jax.random.uniform(kt, (B,), jnp.float32)    # per-sample times
    x = jax.random.normal(kx, (B, DIM), jnp.float32)

    out = fourier_mlp_forward(t, x, packed, dim=DIM, channels=CHANNELS)
    out = jax.block_until_ready(out)
    assert out.shape == (B, DIM), out.shape

    # (1) Kernel-math check against a reference using the same bf16 operand rounding.
    ref_bf16 = fourier_mlp_reference(t, x, params, matmul_dtype=jnp.bfloat16)
    assert jnp.allclose(out, ref_bf16, atol=2e-3, rtol=2e-3), (
        float(jnp.max(jnp.abs(out - ref_bf16))))

    # (2) Semantics check against the full-f32 reference (bf16 MXU operands add ~1e-3 rel err).
    ref_f32 = fourier_mlp_reference(t, x, params, matmul_dtype=jnp.float32)
    assert jnp.allclose(out, ref_f32, atol=5e-2, rtol=5e-2), (
        float(jnp.max(jnp.abs(out - ref_f32))))

    print("KERNEL_OK")
</pallas_src>

<mosaic_0001>
module attributes {stable_mosaic.version = 11 : i64} {
  func.func @fourier_mlp_kernel(%arg0: i32, %arg1: memref<8x5xf32, #tpu.memory_space<vmem>>, %arg2: memref<2x64xf32, #tpu.memory_space<vmem>>, %arg3: memref<128x64xbf16, #tpu.memory_space<vmem>>, %arg4: memref<68x64xbf16, #tpu.memory_space<vmem>>, %arg5: memref<3x64x64xbf16, #tpu.memory_space<vmem>>, %arg6: memref<5x64xf32, #tpu.memory_space<vmem>>, %arg7: memref<8x4xf32, #tpu.memory_space<vmem>>) attributes {dimension_semantics = [#tpu.dimension_semantics<parallel>], iteration_bounds = array<i64: 1>, scalar_prefetch = 0 : i64, scratch_operands = 0 : i64, tpu.core_type = #tpu.core_type<tc>, window_params = [{transform_indices = @transform_0, window_bounds = array<i64: 8, 5>}, {pipeline_mode = #tpu.pipeline_mode<synchronous>, transform_indices = @transform_1, window_bounds = array<i64: 2, 64>}, {pipeline_mode = #tpu.pipeline_mode<synchronous>, transform_indices = @transform_2, window_bounds = array<i64: 128, 64>}, {pipeline_mode = #tpu.pipeline_mode<synchronous>, transform_indices = @transform_3, window_bounds = array<i64: 68, 64>}, {pipeline_mode = #tpu.pipeline_mode<synchronous>, transform_indices = @transform_4, window_bounds = array<i64: 3, 64, 64>}, {pipeline_mode = #tpu.pipeline_mode<synchronous>, transform_indices = @transform_5, window_bounds = array<i64: 5, 64>}, {transform_indices = @transform_6, window_bounds = array<i64: 8, 4>}]} {
    %c0 = arith.constant 0 : index
    %c0_0 = arith.constant 0 : index
    %0 = vector.load %arg1[%c0, %c0_0] : memref<8x5xf32, #tpu.memory_space<vmem>>, vector<8x5xf32>
    %1 = vector.extract_strided_slice %0 {offsets = [0, 0], sizes = [8, 1], strides = [1, 1]} : vector<8x5xf32> to vector<8x1xf32>
    %2 = vector.extract_strided_slice %0 {offsets = [0, 1], sizes = [8, 4], strides = [1, 1]} : vector<8x5xf32> to vector<8x4xf32>
    %c0_1 = arith.constant 0 : index
    %c0_2 = arith.constant 0 : index
    %3 = vector.load %arg2[%c0_1, %c0_2] : memref<2x64xf32, #tpu.memory_space<vmem>>, vector<1x64xf32>
    %c1 = arith.constant 1 : index
    %c0_3 = arith.constant 0 : index
    %4 = vector.load %arg2[%c1, %c0_3] : memref<2x64xf32, #tpu.memory_space<vmem>>, vector<1x64xf32>
    %c0_4 = arith.constant 0 : index
    %c0_5 = arith.constant 0 : index
    %5 = vector.load %arg6[%c0_4, %c0_5] : memref<5x64xf32, #tpu.memory_space<vmem>>, vector<5x64xf32>
    %6 = vector.broadcast %3 : vector<1x64xf32> to vector<8x64xf32>
    %7 = vector.broadcast %1 : vector<8x1xf32> to vector<8x64xf32>
    %8 = arith.mulf %6, %7 : vector<8x64xf32>
    %9 = vector.broadcast %4 : vector<1x64xf32> to vector<8x64xf32>
    %10 = arith.addf %8, %9 : vector<8x64xf32>
    %11 = math.sin %10 : vector<8x64xf32>
    %12 = math.cos %10 : vector<8x64xf32>
    %13 = tpu.concatenate %11, %12 in 1 : vector<8x64xf32>, vector<8x64xf32> -> vector<8x128xf32>
    %c0_6 = arith.constant 0 : index
    %c0_7 = arith.constant 0 : index
    %14 = vector.load %arg3[%c0_6, %c0_7] : memref<128x64xbf16, #tpu.memory_space<vmem>>, vector<128x64xbf16>
    %15 = arith.truncf %13 : vector<8x128xf32> to vector<8x128xbf16>
    %cst = arith.constant dense<0.000000e+00> : vector<8x64xf32>
    %16 = tpu.matmul %15, %14, %cst {dimension_numbers = #tpu.dot_dimension_numbers<[1], [0], [0], [1], [0, 0, 1, 1], [], []>} : vector<8x128xbf16>, vector<128x64xbf16>, vector<8x64xf32> -> vector<8x64xf32>
    %17 = vector.extract_strided_slice %5 {offsets = [0, 0], sizes = [1, 64], strides = [1, 1]} : vector<5x64xf32> to vector<1x64xf32>
    %18 = vector.broadcast %17 : vector<1x64xf32> to vector<8x64xf32>
    %19 = arith.addf %16, %18 : vector<8x64xf32>
    %20 = arith.mulf %19, %19 : vector<8x64xf32>
    %21 = arith.mulf %19, %20 : vector<8x64xf32>
    %cst_8 = arith.constant 4.471500e-02 : f32
    %22 = vector.broadcast %cst_8 : f32 to vector<8x64xf32>
    %23 = arith.mulf %22, %21 : vector<8x64xf32>
    %24 = arith.addf %19, %23 : vector<8x64xf32>
    %cst_9 = arith.constant 0.797884583 : f32
    %25 = vector.broadcast %cst_9 : f32 to vector<8x64xf32>
    %26 = arith.mulf %25, %24 : vector<8x64xf32>
    %27 = math.tanh %26 : vector<8x64xf32>
    %cst_10 = arith.constant 1.000000e+00 : f32
    %28 = vector.broadcast %cst_10 : f32 to vector<8x64xf32>
    %29 = arith.addf %28, %27 : vector<8x64xf32>
    %cst_11 = arith.constant 5.000000e-01 : f32
    %30 = vector.broadcast %cst_11 : f32 to vector<8x64xf32>
    %31 = arith.mulf %30, %29 : vector<8x64xf32>
    %32 = arith.mulf %19, %31 : vector<8x64xf32>
    %33 = tpu.concatenate %32, %2 in 1 : vector<8x64xf32>, vector<8x4xf32> -> vector<8x68xf32>
    %c0_12 = arith.constant 0 : index
    %c0_13 = arith.constant 0 : index
    %34 = vector.load %arg4[%c0_12, %c0_13] : memref<68x64xbf16, #tpu.memory_space<vmem>>, vector<68x64xbf16>
    %35 = arith.truncf %33 : vector<8x68xf32> to vector<8x68xbf16>
    %cst_14 = arith.constant dense<0.000000e+00> : vector<8x64xf32>
    %36 = tpu.matmul %35, %34, %cst_14 {dimension_numbers = #tpu.dot_dimension_numbers<[1], [0], [0], [1], [0, 0, 1, 1], [], []>} : vector<8x68xbf16>, vector<68x64xbf16>, vector<8x64xf32> -> vector<8x64xf32>
    %37 = vector.extract_strided_slice %5 {offsets = [1, 0], sizes = [1, 64], strides = [1, 1]} : vector<5x64xf32> to vector<1x64xf32>
    %38 = vector.broadcast %37 : vector<1x64xf32> to vector<8x64xf32>
    %39 = arith.addf %36, %38 : vector<8x64xf32>
    %c0_15 = arith.constant 0 : index
    %c0_16 = arith.constant 0 : index
    %c0_17 = arith.constant 0 : index
    %40 = vector.load %arg5[%c0_15, %c0_16, %c0_17] : memref<3x64x64xbf16, #tpu.memory_space<vmem>>, vector<3x64x64xbf16>
    %41 = arith.mulf %39, %39 : vector<8x64xf32>
    %42 = arith.mulf %39, %41 : vector<8x64xf32>
    %cst_18 = arith.constant 4.471500e-02 : f32
    %43 = vector.broadcast %cst_18 : f32 to vector<8x64xf32>
    %44 = arith.mulf %43, %42 : vector<8x64xf32>
    %45 = arith.addf %39, %44 : vector<8x64xf32>
    %cst_19 = arith.constant 0.797884583 : f32
    %46 = vector.broadcast %cst_19 : f32 to vector<8x64xf32>
    %47 = arith.mulf %46, %45 : vector<8x64xf32>
    %48 = math.tanh %47 : vector<8x64xf32>
    %cst_20 = arith.constant 1.000000e+00 : f32
    %49 = vector.broadcast %cst_20 : f32 to vector<8x64xf32>
    %50 = arith.addf %49, %48 : vector<8x64xf32>
    %cst_21 = arith.constant 5.000000e-01 : f32
    %51 = vector.broadcast %cst_21 : f32 to vector<8x64xf32>
    %52 = arith.mulf %51, %50 : vector<8x64xf32>
    %53 = arith.mulf %39, %52 : vector<8x64xf32>
    %54 = vector.extract_strided_slice %40 {offsets = [0, 0, 0], sizes = [1, 64, 64], strides = [1, 1, 1]} : vector<3x64x64xbf16> to vector<1x64x64xbf16>
    %55 = vector.shape_cast %54 : vector<1x64x64xbf16> to vector<64x64xbf16>
    %56 = arith.truncf %53 : vector<8x64xf32> to vector<8x64xbf16>
    %cst_22 = arith.constant dense<0.000000e+00> : vector<8x64xf32>
    %57 = tpu.matmul %56, %55, %cst_22 {dimension_numbers = #tpu.dot_dimension_numbers<[1], [0], [0], [1], [0, 0, 1, 1], [], []>} : vector<8x64xbf16>, vector<64x64xbf16>, vector<8x64xf32> -> vector<8x64xf32>
    %58 = vector.extract_strided_slice %5 {offsets = [2, 0], sizes = [1, 64], strides = [1, 1]} : vector<5x64xf32> to vector<1x64xf32>
    %59 = vector.broadcast %58 : vector<1x64xf32> to vector<8x64xf32>
    %60 = arith.addf %57, %59 : vector<8x64xf32>
    %61 = arith.mulf %60, %60 : vector<8x64xf32>
    %62 = arith.mulf %60, %61 : vector<8x64xf32>
    %cst_23 = arith.constant 4.471500e-02 : f32
    %63 = vector.broadcast %cst_23 : f32 to vector<8x64xf32>
    %64 = arith.mulf %63, %62 : vector<8x64xf32>
    %65 = arith.addf %60, %64 : vector<8x64xf32>
    %cst_24 = arith.constant 0.797884583 : f32
    %66 = vector.broadcast %cst_24 : f32 to vector<8x64xf32>
    %67 = arith.mulf %66, %65 : vector<8x64xf32>
    %68 = math.tanh %67 : vector<8x64xf32>
    %cst_25 = arith.constant 1.000000e+00 : f32
    %69 = vector.broadcast %cst_25 : f32 to vector<8x64xf32>
    %70 = arith.addf %69, %68 : vector<8x64xf32>
    %cst_26 = arith.constant 5.000000e-01 : f32
    %71 = vector.broadcast %cst_26 : f32 to vector<8x64xf32>
    %72 = arith.mulf %71, %70 : vector<8x64xf32>
    %73 = arith.mulf %60, %72 : vector<8x64xf32>
    %74 = vector.extract_strided_slice %40 {offsets = [1, 0, 0], sizes = [1, 64, 64], strides = [1, 1, 1]} : vector<3x64x64xbf16> to vector<1x64x64xbf16>
    %75 = vector.shape_cast %74 : vector<1x64x64xbf16> to vector<64x64xbf16>
    %76 = arith.truncf %73 : vector<8x64xf32> to vector<8x64xbf16>
    %cst_27 = arith.constant dense<0.000000e+00> : vector<8x64xf32>
    %77 = tpu.matmul %76, %75, %cst_27 {dimension_numbers = #tpu.dot_dimension_numbers<[1], [0], [0], [1], [0, 0, 1, 1], [], []>} : vector<8x64xbf16>, vector<64x64xbf16>, vector<8x64xf32> -> vector<8x64xf32>
    %78 = vector.extract_strided_slice %5 {offsets = [3, 0], sizes = [1, 64], strides = [1, 1]} : vector<5x64xf32> to vector<1x64xf32>
    %79 = vector.broadcast %78 : vector<1x64xf32> to vector<8x64xf32>
    %80 = arith.addf %77, %79 : vector<8x64xf32>
    %81 = arith.mulf %80, %80 : vector<8x64xf32>
    %82 = arith.mulf %80, %81 : vector<8x64xf32>
    %cst_28 = arith.constant 4.471500e-02 : f32
    %83 = vector.broadcast %cst_28 : f32 to vector<8x64xf32>
    %84 = arith.mulf %83, %82 : vector<8x64xf32>
    %85 = arith.addf %80, %84 : vector<8x64xf32>
    %cst_29 = arith.constant 0.797884583 : f32
    %86 = vector.broadcast %cst_29 : f32 to vector<8x64xf32>
    %87 = arith.mulf %86, %85 : vector<8x64xf32>
    %88 = math.tanh %87 : vector<8x64xf32>
    %cst_30 = arith.constant 1.000000e+00 : f32
    %89 = vector.broadcast %cst_30 : f32 to vector<8x64xf32>
    %90 = arith.addf %89, %88 : vector<8x64xf32>
    %cst_31 = arith.constant 5.000000e-01 : f32
    %91 = vector.broadcast %cst_31 : f32 to vector<8x64xf32>
    %92 = arith.mulf %91, %90 : vector<8x64xf32>
    %93 = arith.mulf %80, %92 : vector<8x64xf32>
    %94 = vector.extract_strided_slice %40 {offsets = [2, 0, 0], sizes = [1, 64, 64], strides = [1, 1, 1]} : vector<3x64x64xbf16> to vector<1x64x64xbf16>
    %95 = vector.shape_cast %94 : vector<1x64x64xbf16> to vector<64x64xbf16>
    %96 = arith.truncf %93 : vector<8x64xf32> to vector<8x64xbf16>
    %cst_32 = arith.constant dense<0.000000e+00> : vector<8x64xf32>
    %97 = tpu.matmul %96, %95, %cst_32 {dimension_numbers = #tpu.dot_dimension_numbers<[1], [0], [0], [1], [0, 0, 1, 1], [], []>} : vector<8x64xbf16>, vector<64x64xbf16>, vector<8x64xf32> -> vector<8x64xf32>
    %98 = vector.extract_strided_slice %5 {offsets = [4, 0], sizes = [1, 64], strides = [1, 1]} : vector<5x64xf32> to vector<1x64xf32>
    %99 = vector.broadcast %98 : vector<1x64xf32> to vector<8x64xf32>
    %100 = arith.addf %97, %99 : vector<8x64xf32>
    %101 = vector.extract_strided_slice %100 {offsets = [0, 0], sizes = [8, 4], strides = [1, 1]} : vector<8x64xf32> to vector<8x4xf32>
    %c0_33 = arith.constant 0 : index
    %c0_34 = arith.constant 0 : index
    %102 = vector.load %arg7[%c0_33, %c0_34] : memref<8x4xf32, #tpu.memory_space<vmem>>, vector<8x4xf32>
    tpu.vector_store %arg7[%c0_33, %c0_34], %101 {strides = array<i32>} : memref<8x4xf32, #tpu.memory_space<vmem>>, vector<8x4xf32>,
    return
  }
  func.func @transform_0(%arg0: i32) -> (i32, i32) {
    %c0_i32 = arith.constant 0 : i32
    %c0_i32_0 = arith.constant 0 : i32
    return %arg0, %c0_i32 : i32, i32
  }
  func.func @transform_1(%arg0: i32) -> (i32, i32) {
    %c0_i32 = arith.constant 0 : i32
    %c0_i32_0 = arith.constant 0 : i32
    %c0_i32_1 = arith.constant 0 : i32
    return %c0_i32, %c0_i32_0 : i32, i32
  }
  func.func @transform_2(%arg0: i32) -> (i32, i32) {
    %c0_i32 = arith.constant 0 : i32
    %c0_i32_0 = arith.constant 0 : i32
    %c0_i32_1 = arith.constant 0 : i32
    return %c0_i32, %c0_i32_0 : i32, i32
  }
  func.func @transform_3(%arg0: i32) -> (i32, i32) {
    %c0_i32 = arith.constant 0 : i32
    %c0_i32_0 = arith.constant 0 : i32
    %c0_i32_1 = arith.constant 0 : i32
    return %c0_i32, %c0_i32_0 : i32, i32
  }
  func.func @transform_4(%arg0: i32) -> (i32, i32, i32) {
    %c0_i32 = arith.constant 0 : i32
    %c0_i32_0 = arith.constant 0 : i32
    %c0_i32_1 = arith.constant 0 : i32
    %c0_i32_2 = arith.constant 0 : i32
    return %c0_i32, %c0_i32_0, %c0_i32_1 : i32, i32, i32
  }
  func.func @transform_5(%arg0: i32) -> (i32, i32) {
    %c0_i32 = arith.constant 0 : i32
    %c0_i32_0 = arith.constant 0 : i32
    %c0_i32_1 = arith.constant 0 : i32
    return %c0_i32, %c0_i32_0 : i32, i32
  }
  func.func @transform_6(%arg0: i32) -> (i32, i32) {
    %c0_i32 = arith.constant 0 : i32
    %c0_i32_0 = arith.constant 0 : i32
    return %arg0, %c0_i32 : i32, i32
  }
}

</mosaic_0001>

<bundles_post_ra>
// kernel: fourier_mlp_forward.1
= control target key start
LH: loop header
LB: loop body
LE: loop exit
PB: predicated region body
PF: predicated region fallthrough
CT: control target
= control target key end

     0   :  { %v932_v0 = vmov 0   ;;  %v933_v2 = vmov 0.0   ;;  %v934_v26 = vmov 2102212464   ;;  %v935_v28 = vmov 920167782   ;;  %s1147_s0 = inlined_call_operand.vmem [shape: f32[8,5], index: 0, kind: input, shape index: {}]   ;;  %s1148_s2 = inlined_call_operand.vmem [shape: bf16[128,64], index: 2, kind: input, shape index: {}]   ;;  %s1149_s1 = inlined_call_operand.vmem [shape: f32[2,64], index: 1, kind: input, shape index: {}]   ;;  %s1150_s3 = inlined_call_operand.vmem [shape: bf16[68,64], index: 3, kind: input, shape index: {}]   ;;  %s1151_s5 = inlined_call_operand.vmem [shape: f32[5,64], index: 5, kind: input, shape index: {}]   ;;  %s1152_s4 = inlined_call_operand.vmem [shape: bf16[3,64,64], index: 4, kind: input, shape index: {}]   ;;  %s1153_s6 = inlined_call_operand.vmem [shape: f32[8,4], index: 6, kind: output, shape index: {}]  }
   0x1   :  { %894 = vset.pattern.permute.xlu0 %v932_v0  ;;  %v981_v1 = vld [vmem:[%s1147_s0] sm:$0xff]  ;;  %809 = vmatprep.subr.bf16.mxu0 %v933_v2  ;;  %v896_v4 = vld [vmem:[%s1148_s2 + $0x8] sm:$0xff]   ;;  %v897_v5 = vld [vmem:[%s1148_s2 + $0x10] sm:$0xff]   ;;  %v936_v32 = vmov 1326507024   ;;  %vm940_vm9 = vmmov 0  }
   0x2   :  { %34 = vperm.xlu0 %894, %v981_v1   ;;  %v895_v3 = vld [vmem:[%s1148_s2] sm:$0xff]   ;;  %829 = vmatprep.subr.bf16.mxu1 %v933_v2  ;;  %v898_v6 = vld [vmem:[%s1148_s2 + $0x18] sm:$0xff]   ;;  %v900_v8 = vld [vmem:[%s1148_s2 + $0x28] sm:$0xff]   ;;  %v937_v34 = vmov 683565275   ;;  %s941_s17 = smov 63  }
   0x3   :  { %810 = vmatpush3.bf16.msra.mxu0 %v895_v3  ;;  %v899_v7 = vld [vmem:[%s1148_s2 + $0x20] sm:$0xff]   ;;  %v901_v9 = vld [vmem:[%s1148_s2 + $0x30] sm:$0xff]   ;;  %v938_v36 = vmov 2475754826   ;;  %v939_v39 = vmov 2131351028   ;;  %825 = vmatprep.mubr.msk.bf16.mxu0 %vm940_vm9, %v933_v2 }
   0x4   :  { %811 = vmatprep.subr.bf16.mxu0 %v933_v2  ;;  %v740_v10 = vld [vmem:[%s1149_s1] ss:$0 sm:$0xff]  ;;  %v741_v11 = vld [vmem:[%s1149_s1 + $0x1] ss:$0 sm:$0xff]  ;;  %839 = vmatprep.mubr.msk.bf16.mxu1 %vm940_vm9, %v933_v2 }
   0x5   :  { %374 = vrot.lane.b32.xlu1 %v981_v1, %s941_s17 }
   0x7   :  { %812 = vmatpush3.bf16.msra.mxu0 %v896_v4 }
   0x8   :  { %813 = vmatprep.subr.bf16.mxu0 %v933_v2 }
   0xb   :  { %814 = vmatpush3.bf16.msra.mxu0 %v897_v5 }
   0xc   :  { %815 = vmatprep.subr.bf16.mxu0 %v933_v2 }
   0xf   :  { %816 = vmatpush3.bf16.msra.mxu0 %v898_v6 }
  0x10   :  { %817 = vmatprep.subr.bf16.mxu0 %v933_v2 }
  0x13   :  { %818 = vmatpush3.bf16.msra.mxu0 %v899_v7 }
  0x14   :  { %819 = vmatprep.subr.bf16.mxu0 %v933_v2 }
  0x17   :  { %820 = vmatpush3.bf16.msra.mxu0 %v900_v8 }
  0x18   :  { %821 = vmatprep.subr.bf16.mxu0 %v933_v2 }
  0x1b   :  { %822 = vmatpush3.bf16.msra.mxu0 %v901_v9 }
  0x1c   :  { %823 = vmatprep.subr.bf16.mxu0 %v933_v2 }
  0x81   :  { %v35_v12 = vpop.permute.xlu0 %34 }
  0x82   :  { %v37_v13 = vmul.f32 %v740_v10, %v35_v12 }
  0x84   :  { %v1020_v14 = vadd.f32 %v741_v11, %v37_v13 }
  0x86   :  { %v46_v15 = vand.u32 2139095040, %v1020_v14  ;;  %v43_v16 = vand.u32 2147483647, %v1020_v14  ;;  %vm45_vm7 = vcmp.lt.s32.totalorder %v1020_v14, 0 }
  0x88   :  { %v47_v17 = vshrl.u32 %v46_v15, 23  ;;  %v50_v19 = vand.u32 8388607, %v43_v16  ;;  %vm44_vm8 = vcmp.le.f32.partialorder %v43_v16, 0.7853982 }
  0x8a   :  { %v742_v18 = vadd.s32 4294967169, %v47_v17  ;;  %v51_v22 = vor.u32 8388608, %v50_v19 }
  0x8c   :  { %v53_v20 = vadd.s32 1, %v742_v18  ;;  %v91_v30 = vshll.u32 %v51_v22, 8 }
  0x8e   :  { %vm54_vm0 = vcmp.gt.s32.totalorder %v53_v20, 0 }
  0x8f   :  { %v55_v21 = vsel %vm54_vm0, %v53_v20, 0  ;;  %vm135_vm0 = vweird.f32 %v1020_v14 }
  0x90   :  { %v57_v23 = vand.u32 31, %v55_v21  ;;  %v56_v24 = vshrl.u32 %v55_v21, 5 }
  0x92   :  { %v58_v25 = vsub.s32 32, %v57_v23  ;;  %v69_v27 = vshll.u32 %v934_v26, %v57_v23  ;;  %v72_v29 = vshll.u32 %v935_v28, %v57_v23  ;;  %v60_v35 = vshll.u32 %v937_v34, %v57_v23 }
  0x93   :  { %v63_v38 = vshll.u32 %v938_v36, %v57_v23  ;;  %v66_v41 = vshll.u32 %v939_v39, %v57_v23  ;;  %vm78_vm1 = vcmp.lt.s32.totalorder %v56_v24, 4  ;;  %vm75_vm2 = vcmp.lt.s32.totalorder %v56_v24, 1 }
  0x94   :  { %v70_v31 = vshrl.u32 %v935_v28, %v58_v25  ;;  %v73_v33 = vshrl.u32 %v936_v32, %v58_v25  ;;  %v61_v37 = vshrl.u32 %v938_v36, %v58_v25  ;;  %v64_v40 = vshrl.u32 %v939_v39, %v58_v25 }
  0x95   :  { %v67_v42 = vshrl.u32 %v934_v26, %v58_v25  ;;  %v59_v46 = vshrl.u32 %v937_v34, %v58_v25  ;;  %vm76_vm3 = vcmp.lt.s32.totalorder %v56_v24, 2  ;;  %vm77_vm4 = vcmp.lt.s32.totalorder %v56_v24, 3 }
  0x96   :  { %v71_v43 = vor.u32 %v70_v31, %v69_v27  ;;  %v74_v44 = vor.u32 %v73_v33, %v72_v29  ;;  %v62_v45 = vor.u32 %v61_v37, %v60_v35  ;;  %v65_v47 = vor.u32 %v64_v40, %v63_v38  ;;  %v902_v37 = vld [vmem:[%s1148_s2 + $0x38] sm:$0xff]   ;;  %s942_s2 = smov 64  }
  0x97   :  { %v68_v48 = vor.u32 %v67_v42, %v66_v41  ;;  %824 = vmatpush3.bf16.msra.mxu0 %v902_v37 }
  0x98   :  { %v84_v49 = vsel %vm78_vm1, %v71_v43, 920167782  ;;  %v88_v50 = vsel %vm78_vm1, %v74_v44, 1326507024  ;;  %v83_v52 = vsel %vm75_vm2, %v62_v45, %v65_v47  ;;  %v79_v55 = vsel %vm75_vm2, %v59_v46, %v62_v45  ;;  %855 = vmatprep.subr.bf16.mxu0 %v933_v2 }
  0x99   :  { %v80_v51 = vsel %vm78_vm1, %v68_v48, 2102212464  ;;  %v85_v53 = vsel %vm77_vm4, %v68_v48, %v84_v49  ;;  %v87_v54 = vsel %vm75_vm2, %v65_v47, %v68_v48  ;;  %v89_v58 = vsel %vm77_vm4, %v71_v43, %v88_v50 }
  0x9a   :  { %v81_v56 = vsel %vm77_vm4, %v65_v47, %v80_v51  ;;  %v86_v57 = vsel %vm76_vm3, %v83_v52, %v85_v53  ;;  %v90_v59 = vsel %vm76_vm3, %v87_v54, %v89_v58  ;;  %vm254_vm1 = vcmask 523264   ;;  %v903_v53 = vld [vmem:[%s1150_s3] sm:$0xff]   ;;  %v905_v54 = vld [vmem:[%s1150_s3 + $0x10] sm:$0xff]  }
  0x9b   :  { %v1026_v60 = vmul.u32.u64.low %v91_v30, %v86_v57  ;;  %v1027_v61 = vmul.u32.u64.high %v91_v30, %v86_v57, %v1026_v60  ;;  %v1029_v62 = vmul.u32.u64.low %v91_v30, %v90_v59  ;;  %v1030_v63 = vmul.u32.u64.high %v91_v30, %v90_v59, %v1029_v62  ;;  %830 = vmatpush3.bf16.msra.mxu1 %v903_v53 }
  0x9c   :  { %v82_v0 = vsel %vm76_vm3, %v79_v55, %v81_v56  ;;  %831 = vmatprep.subr.bf16.mxu1 %v933_v2  ;;  %v906_v55 = vld [vmem:[%s1150_s3 + $0x18] sm:$0xff]   ;;  %v907_v56 = vld [vmem:[%s1150_s3 + $0x20] ss:$0 sps:$4 sm:$0x33]   ;;  %vm423_vm2 = vcmask 1041408   ;;  %v273_v58 = vlaneseq  ;;  %vm419_vm3 = vcmask 556032  }
  0x9d   :  { %v101_v3 = vadd.s32 1, %v1027_v61  ;;  %v98_v4 = vmul.u32 %v91_v30, %v82_v0  ;;  %vm100_vm5 = vc.u32 %v1030_v63, %v1026_v60  ;;  %v99_v18 = vadd.s32 %v1026_v60, %v1030_v63 }
  0x9e   :  { %v425_v57 = vsel %vm423_vm2, %v907_v56, 0  ;;  %v1073_v59 = vshrl.u32 %v273_v58, 7  ;;  %vm734_vm4 = vcmask 31744  }
  0x9f   :  { %v102_v5 = vsel %vm100_vm5, %v101_v3, %v1027_v61  ;;  %v1079_v61 = vld [vmem:[%s1151_s5] sm:$0x1f] }
  0xa0   :  { %v103_v6 = vadd.s32 %v102_v5, %v98_v4  ;;  %v275_v60 = vsub.s32 0, %v1073_v59 }
  0xa2   :  { %v104_v7 = vadd.s32 536870912, %v103_v6  ;;  %v276_v62 = vrot.slane %v1079_v61, %v275_v60  ;;  %v916_v60 = vld [vmem:[%s1152_s4 + $0x40] sm:$0xff]  }
  0xa4   :  { %v105_v8 = vshrl.u32 %v104_v7, 30 }
  0xa6   :  { %v106_v9 = vshll.u32 %v105_v8, 30  ;;  %v129_v30 = vsub.s32 4, %v105_v8 }
  0xa8   :  { %v107_v10 = vsub.s32 %v103_v6, %v106_v9  ;;  %v130_v33 = vsel %vm45_vm7, %v129_v30, %v105_v8 }
  0xa9   :  { %v132_v35 = vsel %vm44_vm8, 0, %v130_v33 }
  0xaa   :  { %v109_v11 = vsub.s32 0, %v107_v10  ;;  %v136_v36 = vadd.s32 3, %v132_v35  ;;  %v240_v38 = vand.u32 3, %v132_v35 }
  0xac   :  { %v743_v12 = vmin.u32 %v109_v11, %v107_v10  ;;  %v137_v16 = vand.u32 3, %v136_v36  ;;  %vm245_vm11 = vcmp.eq.s32.totalorder %v240_v38, 2  ;;  %vm242_vm13 = vcmp.eq.s32.totalorder %v240_v38, 0 }
  0xad   :  { %vm241_vm15 = vcmp.lt.s32.totalorder %v240_v38, 2 }
  0xae   :  { %v111_v13 = vclz %v743_v12  ;;  %vm142_vm10 = vcmp.eq.s32.totalorder %v137_v16, 2  ;;  %vm139_vm12 = vcmp.eq.s32.totalorder %v137_v16, 0  ;;  %vm138_vm14 = vcmp.lt.s32.totalorder %v137_v16, 2 }
  0xb0   :  { %v744_v15 = vadd.s32 4294967294, %v111_v13 }
  0xb2   :  { %vm745_vm6 = vcmp.lt.s32.totalorder %v744_v15, 0 }
  0xb3   :  { %v114_v17 = vsel %vm745_vm6, 0, %v744_v15  ;;  %v375_v15 = vpop.permute.xlu1 %374 }
  0xb4   :  { %v115_v19 = vsub.s32 32, %v114_v17  ;;  %v119_v20 = vsub.s32 4294967266, %v114_v17  ;;  %v116_v21 = vshll.u32 %v107_v10, %v114_v17 }
  0xb6   :  { %v117_v22 = vshrl.u32 %v99_v18, %v115_v19  ;;  %v120_v23 = vadd.s32 127, %v119_v20  ;;  %v908_v20 = vld [vmem:[%s1152_s4] sm:$0xff]  }
  0xb8   :  { %v118_v24 = vor.u32 %v117_v22, %v116_v21  ;;  %v121_v25 = vshll.u32 %v120_v23, 23  ;;  %v909_v21 = vld [vmem:[%s1152_s4 + $0x8] sm:$0xff]   ;;  %v910_v22 = vld [vmem:[%s1152_s4 + $0x10] sm:$0xff]   ;;  %v911_v23 = vld [vmem:[%s1152_s4 + $0x18] sm:$0xff]  }
  0xba   :  { %v122_v26 = vor.u32 4788187, %v121_v25  ;;  %v125_v28 = vcvt.s32.f32 %v118_v24  ;;  %v390_v24 = vsub.s32 1, %v1073_v59 }
  0xbc   :  { %v123_v27 = vand.u32 2147483647, %v122_v26  ;;  %v391_v25 = vrot.slane %v1079_v61, %v390_v24 }
  0xbe   :  { %v126_v29 = vmul.f32 %v125_v28, %v123_v27 }
  0xc0   :  { %v127_v31 = vxor.u32 2147483648, %v126_v29 }
  0xc2   :  { %v128_v32 = vsel %vm45_vm7, %v127_v31, %v126_v29 }
  0xc3   :  { %v131_v34 = vsel %vm44_vm8, %v1020_v14, %v128_v32  ;;  %v904_v14 = vld [vmem:[%s1150_s3 + $0x8] sm:$0xff]  }
  0xc4   :  { %920 = vcosq.f32 %v131_v34  ;;  %832 = vmatpush3.bf16.msra.mxu1 %v904_v14 }
  0xc5   :  { %922 = vsinq.f32 %v131_v34  ;;  %833 = vmatprep.subr.bf16.mxu1 %v933_v2 }
  0xc8   :  { %834 = vmatpush3.bf16.msra.mxu1 %v905_v54 }
  0xc9   :  { %835 = vmatprep.subr.bf16.mxu1 %v933_v2 }
  0xcc   :  { %836 = vmatpush3.bf16.msra.mxu1 %v906_v55 }
  0xcd   :  { %837 = vmatprep.subr.bf16.mxu1 %v933_v2 }
  0xce   :  { %v921_v39 = vpop.eup %920 }
  0xcf   :  { %v923_v40 = vpop.eup %922  ;;  %v143_v41 = vxor.u32 2147483648, %v921_v39 }
  0xd0   :  { %v140_v42 = vxor.u32 2147483648, %v923_v40  ;;  %838 = vmatpush3.bf16.msra.mxu1 %v425_v57 }
  0xd1   :  { %v247_v43 = vsel %vm245_vm11, %v143_v41, %v923_v40  ;;  %v144_v44 = vsel %vm142_vm10, %v143_v41, %v923_v40  ;;  %843 = vmatprep.subr.bf16.mxu1 %v933_v2  ;;  %v912_v40 = vld [vmem:[%s1152_s4 + $0x20] sm:$0xff]   ;;  %v913_v41 = vld [vmem:[%s1152_s4 + $0x28] sm:$0xff]  }
  0xd2   :  { %v244_v45 = vsel %vm242_vm13, %v921_v39, %v140_v42  ;;  %v141_v46 = vsel %vm139_vm12, %v921_v39, %v140_v42  ;;  %v914_v42 = vld [vmem:[%s1152_s4 + $0x30] sm:$0xff]  }
  0xd3   :  { %v248_v47 = vsel %vm241_vm15, %v244_v45, %v247_v43  ;;  %v145_v48 = vsel %vm138_vm14, %v141_v46, %v144_v44  ;;  %v915_v43 = vld [vmem:[%s1152_s4 + $0x38] sm:$0xff]   ;;  %v503_v44 = vsub.s32 2, %v1073_v59 }
  0xd4   :  { %v249_v49 = vsel %vm135_vm0, nan, %v248_v47  ;;  %v146_v1 = vsel %vm135_vm0, nan, %v145_v48 }
  0xd5   :  { %251 = vrot.lane.b32.xlu0 %v249_v49, %s942_s2  ;;  %v504_v45 = vrot.slane %v1079_v61, %v503_v44 }
 0x147   :  { %v252_v50 = vpop.permute.xlu0 %251 }
 0x148   :  { %v255_v51 = vsel %vm254_vm1, %v146_v1, %v252_v50 }
 0x149   :  { %v272_v52 = vpack.c.bf16 %v255_v51, %v255_v51 }
 0x14b   :  { %826 = vmatmul.mubr.bf16.vlgmr.msra.gmra.mrb[0].mxu0 %v272_v52 }
 0x14c   :  { %863 = vmatprep.mubr.msk.bf16.mxu0 %vm940_vm9, %v933_v2  ;;  %856 = vmatpush3.bf16.msra.mxu0 %v912_v40 }
 0x14d   :  { %857 = vmatprep.subr.bf16.mxu0 %v933_v2 }
 0x150   :  { %858 = vmatpush3.bf16.msra.mxu0 %v913_v41 }
 0x151   :  { %859 = vmatprep.subr.bf16.mxu0 %v933_v2 }
 0x154   :  { %860 = vmatpush3.bf16.msra.mxu0 %v914_v42 }
 0x155   :  { %861 = vmatprep.subr.bf16.mxu0 %v933_v2 }
 0x158   :  { %862 = vmatpush3.bf16.msra.mxu0 %v915_v43 }
 0x21e   :  { %v359_v63 = vpop.f32.mrb[0].mxu0 }
 0x21f   :  { %v360_v0 = vadd.f32 %v359_v63, %v276_v62  ;;  %v827_v3 = vpop.f32.mrb[1].mxu0  ;;  %v917_v62 = vld [vmem:[%s1152_s4 + $0x48] sm:$0xff]   ;;  %v918_v63 = vld [vmem:[%s1152_s4 + $0x50] sm:$0xff]  }
 0x220   :  { %v362_v4 = vpop.f32.mrb[2].mxu0  ;;  %v584_v3 = vsub.s32 3, %v1073_v59 }
 0x221   :  { %v365_v5 = vmul.f32 %v360_v0, %v360_v0  ;;  %v828_v6 = vpop.f32.mrb[3].mxu0 }
 0x222   :  { %v585_v4 = vrot.slane %v1079_v61, %v584_v3 }
 0x223   :  { %v366_v7 = vmul.f32 %v365_v5, %v360_v0 }
 0x225   :  { %v367_v8 = vmul.f32 0.044715, %v366_v7 }
 0x227   :  { %v368_v9 = vadd.f32 %v367_v8, %v360_v0 }
 0x229   :  { %v369_v10 = vmul.f32 0.7978846, %v368_v9 }
 0x22b   :  { %924 = vtanh.f32 %v369_v10 }
 0x235   :  { %v925_v11 = vpop.eup %924 }
 0x236   :  { %v371_v12 = vadd.f32 1.0, %v925_v11 }
 0x238   :  { %v372_v13 = vmul.f32 0.5, %v371_v12 }
 0x23a   :  { %v373_v17 = vmul.f32 %v372_v13, %v360_v0  ;;  %v919_v0 = vld [vmem:[%s1152_s4 + $0x58] sm:$0xff]  }
 0x23c   :  { %v377_v18 = vsel %vm254_vm1, %v373_v17, %v375_v15 }
 0x23d   :  { %v387_v19 = vpack.c.bf16 %v377_v18, %v377_v18 }
 0x23f   :  { %840 = vmatmul.mubr.msk.bf16.vlgmr.msra.gmra.mrb[0].mxu1 %vm419_vm3, %v387_v19 }
 0x240   :  { %851 = vmatprep.mubr.msk.bf16.mxu1 %vm940_vm9, %v933_v2  ;;  %844 = vmatpush3.bf16.msra.mxu1 %v908_v20 }
 0x241   :  { %845 = vmatprep.subr.bf16.mxu1 %v933_v2 }
 0x244   :  { %846 = vmatpush3.bf16.msra.mxu1 %v909_v21  ;;  %v665_v21 = vsub.s32 4, %v1073_v59 }
 0x245   :  { %847 = vmatprep.subr.bf16.mxu1 %v933_v2 }
 0x248   :  { %848 = vmatpush3.bf16.msra.mxu1 %v910_v22  ;;  %v666_v22 = vrot.slane %v1079_v61, %v665_v21 }
 0x249   :  { %849 = vmatprep.subr.bf16.mxu1 %v933_v2 }
 0x24c   :  { %850 = vmatpush3.bf16.msra.mxu1 %v911_v23 }
 0x24d   :  { %867 = vmatprep.subr.bf16.mxu1 %v933_v2 }
 0x312   :  { %v461_v26 = vpop.f32.mrb[0].mxu1 }
 0x313   :  { %v462_v27 = vadd.f32 %v461_v26, %v391_v25  ;;  %v841_v28 = vpop.f32.mrb[1].mxu1 }
 0x314   :  { %v464_v29 = vpop.f32.mrb[2].mxu1 }
 0x315   :  { %v491_v30 = vmul.f32 %v462_v27, %v462_v27  ;;  %v842_v31 = vpop.f32.mrb[3].mxu1 }
 0x317   :  { %v492_v32 = vmul.f32 %v491_v30, %v462_v27 }
 0x319   :  { %v493_v33 = vmul.f32 0.044715, %v492_v32 }
 0x31b   :  { %v494_v34 = vadd.f32 %v493_v33, %v462_v27 }
 0x31d   :  { %v495_v35 = vmul.f32 0.7978846, %v494_v34 }
 0x31f   :  { %926 = vtanh.f32 %v495_v35 }
 0x329   :  { %v927_v36 = vpop.eup %926 }
 0x32a   :  { %v497_v37 = vadd.f32 1.0, %v927_v36 }
 0x32c   :  { %v498_v16 = vmul.f32 0.5, %v497_v37 }
 0x32e   :  { %v499_v38 = vmul.f32 %v498_v16, %v462_v27 }
 0x330   :  { %v500_v39 = vpack.c.bf16 %v499_v38, %v499_v38 }
 0x332   :  { %852 = vmatmul.mubr.msk.bf16.vlgmr.msra.gmra.mrb[4].mxu1 %vm254_vm1, %v500_v39 }
 0x333   :  { %875 = vmatprep.mubr.msk.bf16.mxu1 %vm940_vm9, %v933_v2  ;;  %868 = vmatpush3.bf16.msra.mxu1 %v916_v60 }
 0x334   :  { %869 = vmatprep.subr.bf16.mxu1 %v933_v2 }
 0x337   :  { %870 = vmatpush3.bf16.msra.mxu1 %v917_v62 }
 0x338   :  { %871 = vmatprep.subr.bf16.mxu1 %v933_v2 }
 0x33b   :  { %872 = vmatpush3.bf16.msra.mxu1 %v918_v63 }
 0x33c   :  { %873 = vmatprep.subr.bf16.mxu1 %v933_v2 }
 0x33f   :  { %874 = vmatpush3.bf16.msra.mxu1 %v919_v0 }
 0x405   :  { %v566_v46 = vpop.f32.mrb[4].mxu1 }
 0x406   :  { %v567_v47 = vadd.f32 %v566_v46, %v504_v45  ;;  %v853_v48 = vpop.f32.mrb[5].mxu1 }
 0x407   :  { %v569_v49 = vpop.f32.mrb[6].mxu1 }
 0x408   :  { %v572_v1 = vmul.f32 %v567_v47, %v567_v47  ;;  %v854_v50 = vpop.f32.mrb[7].mxu1 }
 0x40a   :  { %v573_v51 = vmul.f32 %v572_v1, %v567_v47 }
 0x40c   :  { %v574_v52 = vmul.f32 0.044715, %v573_v51 }
 0x40e   :  { %v575_v53 = vadd.f32 %v574_v52, %v567_v47 }
 0x410   :  { %v576_v14 = vmul.f32 0.7978846, %v575_v53 }
 0x412   :  { %928 = vtanh.f32 %v576_v14 }
 0x41c   :  { %v929_v54 = vpop.eup %928 }
 0x41d   :  { %v578_v55 = vadd.f32 1.0, %v929_v54 }
 0x41f   :  { %v579_v56 = vmul.f32 0.5, %v578_v55 }
 0x421   :  { %v580_v57 = vmul.f32 %v579_v56, %v567_v47 }
 0x423   :  { %v581_v58 = vpack.c.bf16 %v580_v57, %v580_v57 }
 0x425   :  { %864 = vmatmul.mubr.msk.bf16.vlgmr.msra.gmra.mrb[4].mxu0 %vm254_vm1, %v581_v58 }
 0x4f8   :  { %v647_v5 = vpop.f32.mrb[4].mxu0 }
 0x4f9   :  { %v648_v6 = vadd.f32 %v647_v5, %v585_v4  ;;  %v865_v7 = vpop.f32.mrb[5].mxu0 }
 0x4fa   :  { %v650_v8 = vpop.f32.mrb[6].mxu0 }
 0x4fb   :  { %v653_v9 = vmul.f32 %v648_v6, %v648_v6  ;;  %v866_v10 = vpop.f32.mrb[7].mxu0 }
 0x4fd   :  { %v654_v11 = vmul.f32 %v653_v9, %v648_v6 }
 0x4ff   :  { %v655_v12 = vmul.f32 0.044715, %v654_v11 }
 0x501   :  { %v656_v13 = vadd.f32 %v655_v12, %v648_v6 }
 0x503   :  { %v657_v15 = vmul.f32 0.7978846, %v656_v13 }
 0x505   :  { %930 = vtanh.f32 %v657_v15 }
 0x50f   :  { %v931_v2 = vpop.eup %930 }
 0x510   :  { %v659_v17 = vadd.f32 1.0, %v931_v2 }
 0x512   :  { %v660_v18 = vmul.f32 0.5, %v659_v17 }
 0x514   :  { %v661_v19 = vmul.f32 %v660_v18, %v648_v6 }
 0x516   :  { %v662_v20 = vpack.c.bf16 %v661_v19, %v661_v19 }
 0x518   :  { %876 = vmatmul.mubr.msk.bf16.vlgmr.msra.gmra.mrb[8].mxu1 %vm254_vm1, %v662_v20 }
 0x5eb   :  { %v728_v23 = vpop.f32.mrb[8].mxu1 }
 0x5ec   :  { %v729_v24 = vadd.f32 %v728_v23, %v666_v22  ;;  %v877_v25 = vpop.f32.mrb[9].mxu1 }
 0x5ed   :  { %v731_v26 = vpop.f32.mrb[10].mxu1 }
 0x5ee   :  { %735 = vst.msk [vmem:[%s1153_s6] sm:$0xff] %vm734_vm4, %v729_v24  ;;  %v878_v27 = vpop.f32.mrb[11].mxu1 }

</bundles_post_ra>
